<compile_context>
chip_gen: v7x
topology: tpu7x:2x2x1
jax: 0.10.0
libtpu: 0.0.40
codegen_flags: <defaults>
</compile_context>

<pallas_src>
import functools

import jax
import jax.numpy as jnp
from jax.experimental import pallas as pl
from jax.experimental.pallas import tpu as pltpu


# ----------------------------------------------------------------------------
# helpers
# ----------------------------------------------------------------------------
def _round_up(x, m):
    return ((x + m - 1) // m) * m


def _chip_tuning():
    """Per-generation (target block bytes, scoped VMEM limit)."""
    try:
        vmem_cap = int(pltpu.get_tpu_info().vmem_capacity_bytes)
    except Exception:
        # Unknown backend / interpret mode: conservative defaults.
        return 4 * 1024 * 1024, 32 * 1024 * 1024
    if vmem_cap >= 96 * 1024 * 1024:
        # v5e / v6e: 128 MiB physical VMEM.
        return 8 * 1024 * 1024, 64 * 1024 * 1024
    # v7x-class: 64 MiB physical VMEM — big blocks to amortize per-step
    # pipeline overhead against ~3.2 TB/s HBM, but a bounded scoped limit.
    return 8 * 1024 * 1024, 48 * 1024 * 1024


def _pick_col_tile(S, bytes_per_col, target_block_bytes):
    """Largest 128 * 2**k lane tile such that one (source + target) block is
    about `target_block_bytes` without grossly overshooting the spatial extent."""
    target_elems = max(128, target_block_bytes // max(bytes_per_col, 1))
    s_cap = _round_up(S, 128)
    ct = 128
    while ct * 2 <= target_elems and ct * 2 <= s_cap:
        ct *= 2
    return ct


def _lane_fold(x):
    """(C, w) -> (C, 128) partial sum via static halving adds.

    w is 128 * 2**k, so every slice boundary is a multiple of 128 lanes: this
    lowers to plain VPU vadds (no XLU cross-lane reduce, no relayout)."""
    w = x.shape[-1]
    while w > 128:
        w //= 2
        x = x[:, :w] + x[:, w:]
    return x


# ----------------------------------------------------------------------------
# Pallas kernel: per-(batch, class) spatial reductions
# ----------------------------------------------------------------------------
def _dice_reduce_kernel(s_ref, t_ref, inter_ref, svol_ref, tvol_ref, *,
                        S, col_tile, tiles_per_split, C, softmax,
                        target_is_mask, needs_mask):
    p = pl.program_id(1)    # spatial split (TensorCore parallelism on v7x)
    si = pl.program_id(2)   # reduction step inside the split

    @pl.when(si == 0)
    def _init():
        inter_ref[...] = jnp.zeros_like(inter_ref)
        svol_ref[...] = jnp.zeros_like(svol_ref)
        tvol_ref[...] = jnp.zeros_like(tvol_ref)

    def _accum(masked):
        src = s_ref[0].astype(jnp.float32)                     # (C, col_tile)
        if softmax:
            # Fused class-axis softmax: one reciprocal of the (1, ct)
            # denominator + broadcast multiply instead of C full-width
            # divides.  (approx=True would push it onto the EUP; kept exact
            # so the loss matches the reference to 1e-5.)
            m = jnp.max(src, axis=0, keepdims=True)
            e = jnp.exp(src - m)
            inv = pl.reciprocal(jnp.sum(e, axis=0, keepdims=True), approx=False)
            src = e * inv

        if masked:
            # Only emitted for partial / overrun tiles; the mask is applied
            # BEFORE every accumulation (select semantics discard any NaN/Inf
            # produced by the softmax on garbage out-of-range columns).
            start = (p * tiles_per_split + si) * col_tile
            col = jax.lax.broadcasted_iota(jnp.int32, (1, col_tile), 1) + start
            valid = col < S                                    # (1, col_tile)

        if target_is_mask:
            # One-hot compare on the fly; mask streamed at its native
            # (possibly int8) dtype and widened in-register.
            mask = t_ref[0].astype(jnp.int32)                  # (1, col_tile)
            cls = jax.lax.broadcasted_iota(jnp.int32, (C, 1), 0)
            eq = mask == cls                                   # (C, col_tile)
            if masked:
                eq = jnp.logical_and(valid, eq)
                src_v = jnp.where(valid, src, 0.0)
            else:
                src_v = src
            # One-hot folded into the intersection: no (C, ct) multiply.
            inter_c = jnp.where(eq, src, 0.0)
            tgt = eq.astype(jnp.float32)
        else:
            tgt = t_ref[0].astype(jnp.float32)                 # (C, col_tile)
            if masked:
                src_v = jnp.where(valid, src, 0.0)
                tgt = jnp.where(valid, tgt, 0.0)
            else:
                src_v = src
            inter_c = src_v * tgt

        # Lane-dense (C, 128) partial accumulators -> unmasked stores.
        inter_ref[...] += _lane_fold(inter_c)[None, None]
        svol_ref[...] += _lane_fold(src_v)[None, None]
        tvol_ref[...] += _lane_fold(tgt)[None, None]

    if not needs_mask:
        # S is an exact multiple of col_tile and there are no overrun tiles:
        # the masking code is never emitted.
        _accum(masked=False)
    else:
        start = (p * tiles_per_split + si) * col_tile
        is_partial = start + col_tile > S

        @pl.when(jnp.logical_not(is_partial))
        def _full_tile():
            _accum(masked=False)

        @pl.when(is_partial)
        def _tail_tile():
            _accum(masked=True)


def _dice_reductions(source_flat, target_flat, *, softmax, target_is_mask,
                     block_bytes_override=None):
    """source_flat: [B, C, S]; target_flat: [B, 1, S] int mask or [B, C, S].
    Returns (intersection, source_volume, target_volume), each [B, C] f32."""
    B, C, S = source_flat.shape
    block_bytes, vmem_limit = _chip_tuning()
    if block_bytes_override is not None:
        block_bytes = block_bytes_override

    tgt_bytes_per_col = (target_flat.dtype.itemsize if target_is_mask
                         else C * target_flat.dtype.itemsize)
    bytes_per_col = C * source_flat.dtype.itemsize + tgt_bytes_per_col
    col_tile = _pick_col_tile(S, bytes_per_col, block_bytes)
    s_tiles = (S + col_tile - 1) // col_tile

    # Unconditional 2-way spatial split so both v7x TensorCores get work even
    # when B == 1 or s_tiles is odd.  Overrun steps clamp to the last real
    # tile in the index_map and are fully masked to zero in-kernel.  Neutral
    # on single-TC v5e / v6e.
    n_split = 2 if s_tiles >= 2 else 1
    tiles_per_split = (s_tiles + n_split - 1) // n_split
    needs_mask = (S % col_tile != 0) or (n_split * tiles_per_split != s_tiles)

    kernel = functools.partial(
        _dice_reduce_kernel, S=S, col_tile=col_tile,
        tiles_per_split=tiles_per_split, C=C, softmax=softmax,
        target_is_mask=target_is_mask, needs_mask=needs_mask)

    def _col_block(p_idx, s_idx):
        # Clamp overrun steps onto the last real tile (the kernel zeroes them).
        return jnp.minimum(p_idx * tiles_per_split + s_idx, s_tiles - 1)

    src_spec = pl.BlockSpec(
        (1, C, col_tile), lambda b, p, s: (b, 0, _col_block(p, s)))
    tgt_c = 1 if target_is_mask else C
    tgt_spec = pl.BlockSpec(
        (1, tgt_c, col_tile), lambda b, p, s: (b, 0, _col_block(p, s)))
    out_spec = pl.BlockSpec((1, 1, C, 128), lambda b, p, s: (b, p, 0, 0))
    out_shape = tuple(jax.ShapeDtypeStruct((B, n_split, C, 128), jnp.float32)
                      for _ in range(3))

    # TODO(synk): add pipeline_mode=pl.Buffered(3) on src/tgt specs if
    # profiling shows exposed DMA gaps after the larger blocks.
    inter, svol, tvol = pl.pallas_call(
        kernel,
        out_shape=out_shape,
        grid_spec=pltpu.PrefetchScalarGridSpec(
            num_scalar_prefetch=0,
            grid=(B, n_split, tiles_per_split),
            in_specs=[src_spec, tgt_spec],
            out_specs=[out_spec, out_spec, out_spec],
        ),
        compiler_params=pltpu.CompilerParams(
            dimension_semantics=("parallel", "parallel", "arbitrary"),
            vmem_limit_bytes=vmem_limit,
        ),
    )(source_flat, target_flat)

    # Tiny [B, n_split, C, 128] -> [B, C] collapse in plain JAX glue.
    return (inter.sum(axis=(1, 3)),
            svol.sum(axis=(1, 3)),
            tvol.sum(axis=(1, 3)))


# ----------------------------------------------------------------------------
# Forward-pass wrapper reproducing DiceLossMultiClass semantics
# ----------------------------------------------------------------------------
def dice_loss_multiclass(source, target, *, n_class=None, weight_type="Uniform",
                         no_bg=False, softmax=False, eps=1e-7,
                         _block_bytes=None):
    """source: (B, C, D, M, N) class-wise probability / one-hot map (or logits
    if softmax=True).  target: (B, D, M, N) integer mask OR (B, C, D, M, N)
    class-wise probability map."""
    shape = list(source.shape)
    B, C = shape[0], shape[1]
    S = 1
    for d in shape[2:]:
        S *= d

    assert source.shape[0] == target.shape[0]
    tsq = tuple(d for d in target.shape if d != 1)
    assert tuple(source.shape[-3:]) == tsq[-3:]

    if n_class is None:
        # TODO(synk): torch derives n_class from torch.unique of the data
        # (data-dependent); the broadcasting in the torch module requires it
        # to equal the channel count anyway, so use C.
        n_class = C

    source_flat = source.reshape(B, C, S)

    if target.ndim == len(shape) - 1:
        # Integer-mask path: one-hot compare fused into the kernel; the mask
        # is streamed at its native (possibly int8/uint8) dtype — no wrapper
        # upcast, so narrow masks cost 4x less HBM traffic.
        tgt = target.reshape(B, 1, S)
        if not jnp.issubdtype(tgt.dtype, jnp.integer):
            tgt = tgt.astype(jnp.int32)
        inter, svol, tvol = _dice_reductions(
            source_flat, tgt, softmax=softmax, target_is_mask=True,
            block_bytes_override=_block_bytes)
    elif target.shape[1] == C:
        inter, svol, tvol = _dice_reductions(
            source_flat, target.reshape(B, C, S), softmax=softmax,
            target_is_mask=False, block_bytes_override=_block_bytes)
    else:
        raise ValueError("Incorrect size of target tensor: {}".format(target.shape))

    if no_bg:
        # Slicing the tiny [B, C] reduction results == slicing before summing.
        inter, svol, tvol = inter[:, 1:], svol[:, 1:], tvol[:, 1:]

    intersection, source_volume, target_volume = inter, svol, tvol
    Bc, Cc = intersection.shape

    if weight_type == "Simple":
        weights = 1.0 / (target_volume ** (1.0 / 3.0) + eps)
    elif weight_type == "Volume":
        weights = 1.0 / (target_volume + eps)
        temp_weights = jnp.where(jnp.isinf(weights), jnp.ones_like(weights), weights)
        max_weights = jnp.max(temp_weights, axis=1, keepdims=True)
        weights = jnp.where(jnp.isinf(weights),
                            jnp.ones_like(weights) * max_weights, weights)
    elif weight_type == "Uniform":
        weights = jnp.ones((Bc, Cc), dtype=jnp.float32)
    else:
        raise ValueError("Class weighting type {} does not exists!".format(weight_type))

    weights = weights / jnp.max(weights)
    scores = (2.0 * intersection + eps) / (source_volume + target_volume + 2 * eps)
    return 1.0 - jnp.sum(weights * scores) / jnp.sum(weights)


# ----------------------------------------------------------------------------
# Pure-JAX reference (mirrors the torch forward) for correctness checks
# ----------------------------------------------------------------------------
def _reference(source, target, n_class, eps=1e-7):
    B, C = source.shape[0], source.shape[1]
    sf = source.reshape(B, C, -1).astype(jnp.float32)
    t = target.reshape(B, -1).astype(jnp.int32)
    tf = jnp.transpose(jax.nn.one_hot(t, n_class, dtype=jnp.float32), (0, 2, 1))
    sv = sf.sum(2)
    tv = tf.sum(2)
    inter = (sf * tf).sum(2)
    w = jnp.ones((B, C), jnp.float32)
    w = w / w.max()
    scores = (2.0 * inter + eps) / (sv + tv + 2 * eps)
    return 1.0 - (w * scores).sum() / w.sum()


if __name__ == "__main__":
    key = jax.random.PRNGKey(0)
    k1, k2, k3, k4 = jax.random.split(key, 4)

    # ---- Cases A/B/C: B=2, C=4, spatial (4, 8, 8) -> S=256 (full tiles only,
    #      so the mask-free fast path is the only code emitted).
    B, C, D, M, N = 2, 4, 4, 8, 8
    logits = jax.random.normal(k1, (B, C, D, M, N), dtype=jnp.float32)
    probs = jax.nn.softmax(logits, axis=1)                 # class-wise probabilities
    mask = jax.random.randint(k2, (B, D, M, N), 0, C)      # integer ground-truth mask

    ref = _reference(probs, mask, C)

    # A) integer-mask target, probabilities precomputed outside
    loss_a = jax.block_until_ready(dice_loss_multiclass(probs, mask, n_class=C))
    assert jnp.allclose(loss_a, ref, atol=1e-5, rtol=1e-5), (loss_a, ref)

    # B) raw logits with the softmax fused into the kernel
    loss_b = jax.block_until_ready(
        dice_loss_multiclass(logits, mask, n_class=C, softmax=True))
    assert jnp.allclose(loss_b, ref, atol=1e-5, rtol=1e-5), (loss_b, ref)

    # C) probability-map target path (target given as one-hot float volume)
    onehot = jnp.transpose(
        jax.nn.one_hot(mask.reshape(B, -1), C, dtype=jnp.float32),
        (0, 2, 1)).reshape(B, C, D, M, N)
    loss_c = jax.block_until_ready(dice_loss_multiclass(probs, onehot, n_class=C))
    assert jnp.allclose(loss_c, ref, atol=1e-5, rtol=1e-5), (loss_c, ref)

    # ---- Cases D/E: B=1, spatial (5, 23, 3) -> S=345 with a forced tiny block
    #      size so the kernel exercises the multi-tile grid, the unconditional
    #      2-way split with a clamped overrun tile, the partial-tail masking
    #      path, and an int8 (narrow-dtype) mask stream.
    B2, D2, M2, N2 = 1, 5, 23, 3
    logits2 = jax.random.normal(k3, (B2, C, D2, M2, N2), dtype=jnp.float32)
    probs2 = jax.nn.softmax(logits2, axis=1)
    mask2 = jax.random.randint(k4, (B2, D2, M2, N2), 0, C).astype(jnp.int8)

    ref2 = _reference(probs2, mask2, C)

    # D) int8 mask, multi-tile + overrun + partial tail
    loss_d = jax.block_until_ready(
        dice_loss_multiclass(probs2, mask2, n_class=C, _block_bytes=1))
    assert jnp.allclose(loss_d, ref2, atol=1e-5, rtol=1e-5), (loss_d, ref2)

    # E) same, with the fused softmax on the partial-tail path
    loss_e = jax.block_until_ready(
        dice_loss_multiclass(logits2, mask2, n_class=C, softmax=True,
                             _block_bytes=1))
    assert jnp.allclose(loss_e, ref2, atol=1e-5, rtol=1e-5), (loss_e, ref2)

    print("KERNEL_OK")
</pallas_src>

<mosaic_0001>
module attributes {stable_mosaic.version = 11 : i64} {
  func.func @_dice_reduce_kernel(%arg0: i32, %arg1: i32, %arg2: i32, %arg3: memref<1x4x256xf32, #tpu.memory_space<vmem>>, %arg4: memref<1x1x256xi32, #tpu.memory_space<vmem>>, %arg5: memref<1x1x4x128xf32, #tpu.memory_space<vmem>>, %arg6: memref<1x1x4x128xf32, #tpu.memory_space<vmem>>, %arg7: memref<1x1x4x128xf32, #tpu.memory_space<vmem>>) attributes {dimension_semantics = [#tpu.dimension_semantics<parallel>, #tpu.dimension_semantics<parallel>, #tpu.dimension_semantics<arbitrary>], iteration_bounds = array<i64: 2, 1, 1>, scalar_prefetch = 0 : i64, scratch_operands = 0 : i64, tpu.core_type = #tpu.core_type<tc>, window_params = [{transform_indices = @transform_0, window_bounds = array<i64: 1, 4, 256>}, {transform_indices = @transform_1, window_bounds = array<i64: 1, 1, 256>}, {transform_indices = @transform_2, window_bounds = array<i64: 1, 1, 4, 128>}, {transform_indices = @transform_3, window_bounds = array<i64: 1, 1, 4, 128>}, {transform_indices = @transform_4, window_bounds = array<i64: 1, 1, 4, 128>}]} {
    %c0_i32 = arith.constant 0 : i32
    %0 = arith.cmpi eq, %arg2, %c0_i32 : i32
    %1 = arith.extui %0 : i1 to i32
    %c0_i32_0 = arith.constant 0 : i32
    %2 = arith.cmpi ne, %1, %c0_i32_0 : i32
    scf.if %2 {
      %cst_30 = arith.constant 0.000000e+00 : f32
      %36 = vector.broadcast %cst_30 : f32 to vector<1x1x4x128xf32>
      %c0_31 = arith.constant 0 : index
      %c0_32 = arith.constant 0 : index
      %c0_33 = arith.constant 0 : index
      %c0_34 = arith.constant 0 : index
      %37 = vector.load %arg5[%c0_31, %c0_32, %c0_33, %c0_34] : memref<1x1x4x128xf32, #tpu.memory_space<vmem>>, vector<1x1x4x128xf32>
      tpu.vector_store %arg5[%c0_31, %c0_32, %c0_33, %c0_34], %36 {strides = array<i32>} : memref<1x1x4x128xf32, #tpu.memory_space<vmem>>, vector<1x1x4x128xf32>,
      %cst_35 = arith.constant 0.000000e+00 : f32
      %38 = vector.broadcast %cst_35 : f32 to vector<1x1x4x128xf32>
      %c0_36 = arith.constant 0 : index
      %c0_37 = arith.constant 0 : index
      %c0_38 = arith.constant 0 : index
      %c0_39 = arith.constant 0 : index
      %39 = vector.load %arg6[%c0_36, %c0_37, %c0_38, %c0_39] : memref<1x1x4x128xf32, #tpu.memory_space<vmem>>, vector<1x1x4x128xf32>
      tpu.vector_store %arg6[%c0_36, %c0_37, %c0_38, %c0_39], %38 {strides = array<i32>} : memref<1x1x4x128xf32, #tpu.memory_space<vmem>>, vector<1x1x4x128xf32>,
      %cst_40 = arith.constant 0.000000e+00 : f32
      %40 = vector.broadcast %cst_40 : f32 to vector<1x1x4x128xf32>
      %c0_41 = arith.constant 0 : index
      %c0_42 = arith.constant 0 : index
      %c0_43 = arith.constant 0 : index
      %c0_44 = arith.constant 0 : index
      %41 = vector.load %arg7[%c0_41, %c0_42, %c0_43, %c0_44] : memref<1x1x4x128xf32, #tpu.memory_space<vmem>>, vector<1x1x4x128xf32>
      tpu.vector_store %arg7[%c0_41, %c0_42, %c0_43, %c0_44], %40 {strides = array<i32>} : memref<1x1x4x128xf32, #tpu.memory_space<vmem>>, vector<1x1x4x128xf32>,
    } else {
    }
    %c0 = arith.constant 0 : index
    %c0_1 = arith.constant 0 : index
    %c0_2 = arith.constant 0 : index
    %3 = vector.load %arg3[%c0, %c0_1, %c0_2] : memref<1x4x256xf32, #tpu.memory_space<vmem>>, vector<1x4x256xf32>
    %4 = vector.shape_cast %3 : vector<1x4x256xf32> to vector<4x256xf32>
    %c0_3 = arith.constant 0 : index
    %c0_4 = arith.constant 0 : index
    %c0_5 = arith.constant 0 : index
    %5 = vector.load %arg4[%c0_3, %c0_4, %c0_5] : memref<1x1x256xi32, #tpu.memory_space<vmem>>, vector<1x1x256xi32>
    %6 = vector.shape_cast %5 : vector<1x1x256xi32> to vector<1x256xi32>
    %7 = tpu.iota {dimensions = array<i32: 0>} : vector<4x1xi32>
    %8 = vector.broadcast %6 : vector<1x256xi32> to vector<4x256xi32>
    %9 = vector.broadcast %7 : vector<4x1xi32> to vector<4x256xi32>
    %10 = arith.cmpi eq, %8, %9 : vector<4x256xi32>
    %cst = arith.constant 0.000000e+00 : f32
    %11 = vector.broadcast %cst : f32 to vector<4x256xf32>
    %12 = arith.select %10, %4, %11 : vector<4x256xi1>, vector<4x256xf32>
    %13 = arith.extui %10 : vector<4x256xi1> to vector<4x256xi32>
    %14 = arith.sitofp %13 : vector<4x256xi32> to vector<4x256xf32>
    %c0_6 = arith.constant 0 : index
    %c0_7 = arith.constant 0 : index
    %c0_8 = arith.constant 0 : index
    %c0_9 = arith.constant 0 : index
    %15 = vector.load %arg5[%c0_6, %c0_7, %c0_8, %c0_9] : memref<1x1x4x128xf32, #tpu.memory_space<vmem>>, vector<1x1x4x128xf32>
    %16 = vector.extract_strided_slice %12 {offsets = [0, 0], sizes = [4, 128], strides = [1, 1]} : vector<4x256xf32> to vector<4x128xf32>
    %17 = vector.extract_strided_slice %12 {offsets = [0, 128], sizes = [4, 128], strides = [1, 1]} : vector<4x256xf32> to vector<4x128xf32>
    %18 = arith.addf %16, %17 : vector<4x128xf32>
    %19 = vector.shape_cast %18 : vector<4x128xf32> to vector<1x1x4x128xf32>
    %20 = arith.addf %15, %19 : vector<1x1x4x128xf32>
    %c0_10 = arith.constant 0 : index
    %c0_11 = arith.constant 0 : index
    %c0_12 = arith.constant 0 : index
    %c0_13 = arith.constant 0 : index
    %21 = vector.load %arg5[%c0_10, %c0_11, %c0_12, %c0_13] : memref<1x1x4x128xf32, #tpu.memory_space<vmem>>, vector<1x1x4x128xf32>
    tpu.vector_store %arg5[%c0_10, %c0_11, %c0_12, %c0_13], %20 {strides = array<i32>} : memref<1x1x4x128xf32, #tpu.memory_space<vmem>>, vector<1x1x4x128xf32>,
    %c0_14 = arith.constant 0 : index
    %c0_15 = arith.constant 0 : index
    %c0_16 = arith.constant 0 : index
    %c0_17 = arith.constant 0 : index
    %22 = vector.load %arg6[%c0_14, %c0_15, %c0_16, %c0_17] : memref<1x1x4x128xf32, #tpu.memory_space<vmem>>, vector<1x1x4x128xf32>
    %23 = vector.extract_strided_slice %4 {offsets = [0, 0], sizes = [4, 128], strides = [1, 1]} : vector<4x256xf32> to vector<4x128xf32>
    %24 = vector.extract_strided_slice %4 {offsets = [0, 128], sizes = [4, 128], strides = [1, 1]} : vector<4x256xf32> to vector<4x128xf32>
    %25 = arith.addf %23, %24 : vector<4x128xf32>
    %26 = vector.shape_cast %25 : vector<4x128xf32> to vector<1x1x4x128xf32>
    %27 = arith.addf %22, %26 : vector<1x1x4x128xf32>
    %c0_18 = arith.constant 0 : index
    %c0_19 = arith.constant 0 : index
    %c0_20 = arith.constant 0 : index
    %c0_21 = arith.constant 0 : index
    %28 = vector.load %arg6[%c0_18, %c0_19, %c0_20, %c0_21] : memref<1x1x4x128xf32, #tpu.memory_space<vmem>>, vector<1x1x4x128xf32>
    tpu.vector_store %arg6[%c0_18, %c0_19, %c0_20, %c0_21], %27 {strides = array<i32>} : memref<1x1x4x128xf32, #tpu.memory_space<vmem>>, vector<1x1x4x128xf32>,
    %c0_22 = arith.constant 0 : index
    %c0_23 = arith.constant 0 : index
    %c0_24 = arith.constant 0 : index
    %c0_25 = arith.constant 0 : index
    %29 = vector.load %arg7[%c0_22, %c0_23, %c0_24, %c0_25] : memref<1x1x4x128xf32, #tpu.memory_space<vmem>>, vector<1x1x4x128xf32>
    %30 = vector.extract_strided_slice %14 {offsets = [0, 0], sizes = [4, 128], strides = [1, 1]} : vector<4x256xf32> to vector<4x128xf32>
    %31 = vector.extract_strided_slice %14 {offsets = [0, 128], sizes = [4, 128], strides = [1, 1]} : vector<4x256xf32> to vector<4x128xf32>
    %32 = arith.addf %30, %31 : vector<4x128xf32>
    %33 = vector.shape_cast %32 : vector<4x128xf32> to vector<1x1x4x128xf32>
    %34 = arith.addf %29, %33 : vector<1x1x4x128xf32>
    %c0_26 = arith.constant 0 : index
    %c0_27 = arith.constant 0 : index
    %c0_28 = arith.constant 0 : index
    %c0_29 = arith.constant 0 : index
    %35 = vector.load %arg7[%c0_26, %c0_27, %c0_28, %c0_29] : memref<1x1x4x128xf32, #tpu.memory_space<vmem>>, vector<1x1x4x128xf32>
    tpu.vector_store %arg7[%c0_26, %c0_27, %c0_28, %c0_29], %34 {strides = array<i32>} : memref<1x1x4x128xf32, #tpu.memory_space<vmem>>, vector<1x1x4x128xf32>,
    return
  }
  func.func @transform_0(%arg0: i32, %arg1: i32, %arg2: i32) -> (i32, i32, i32) {
    %c1_i32 = arith.constant 1 : i32
    %0 = arith.muli %arg1, %c1_i32 : i32
    %1 = arith.addi %0, %arg2 : i32
    %c0_i32 = arith.constant 0 : i32
    %2 = arith.minsi %1, %c0_i32 : i32
    %c0_i32_0 = arith.constant 0 : i32
    %c0_i32_1 = arith.constant 0 : i32
    return %arg0, %c0_i32_0, %2 : i32, i32, i32
  }
  func.func @transform_1(%arg0: i32, %arg1: i32, %arg2: i32) -> (i32, i32, i32) {
    %c1_i32 = arith.constant 1 : i32
    %0 = arith.muli %arg1, %c1_i32 : i32
    %1 = arith.addi %0, %arg2 : i32
    %c0_i32 = arith.constant 0 : i32
    %2 = arith.minsi %1, %c0_i32 : i32
    %c0_i32_0 = arith.constant 0 : i32
    %c0_i32_1 = arith.constant 0 : i32
    return %arg0, %c0_i32_0, %2 : i32, i32, i32
  }
  func.func @transform_2(%arg0: i32, %arg1: i32, %arg2: i32) -> (i32, i32, i32, i32) {
    %c0_i32 = arith.constant 0 : i32
    %c0_i32_0 = arith.constant 0 : i32
    %c0_i32_1 = arith.constant 0 : i32
    return %arg0, %arg1, %c0_i32, %c0_i32_0 : i32, i32, i32, i32
  }
  func.func @transform_3(%arg0: i32, %arg1: i32, %arg2: i32) -> (i32, i32, i32, i32) {
    %c0_i32 = arith.constant 0 : i32
    %c0_i32_0 = arith.constant 0 : i32
    %c0_i32_1 = arith.constant 0 : i32
    return %arg0, %arg1, %c0_i32, %c0_i32_0 : i32, i32, i32, i32
  }
  func.func @transform_4(%arg0: i32, %arg1: i32, %arg2: i32) -> (i32, i32, i32, i32) {
    %c0_i32 = arith.constant 0 : i32
    %c0_i32_0 = arith.constant 0 : i32
    %c0_i32_1 = arith.constant 0 : i32
    return %arg0, %arg1, %c0_i32, %c0_i32_0 : i32, i32, i32, i32
  }
}

</mosaic_0001>

<bundles_post_ra>
// kernel: tpu_custom_call.1
= control target key start
LH: loop header
LB: loop body
LE: loop exit
PB: predicated region body
PF: predicated region fallthrough
CT: control target
= control target key end

     0   :  { %s1251_s0 = inlined_call_operand.hbm [shape: f32[2,4,256], index: 0, kind: input, shape index: {}]   ;;  %s1252_s1 = inlined_call_operand.hbm [shape: s32[2,1,256], index: 1, kind: input, shape index: {}]   ;;  %s1253_s2 = inlined_call_operand.hbm [shape: f32[2,1,4,128], index: 2, kind: output, shape index: {0}]   ;;  %s1254_s3 = inlined_call_operand.hbm [shape: f32[2,1,4,128], index: 3, kind: output, shape index: {1}]   ;;  %s1255_s4 = inlined_call_operand.hbm [shape: f32[2,1,4,128], index: 4, kind: output, shape index: {2}]  }
   0x1   :  { %1259 = sst [smem:[#allocation15_spill]] %s1251_s0 }
   0x2   :  { %1260 = sst [smem:[#allocation16_spill]] %s1252_s1 }
   0x3   :  { %10 = vsyncpa [#allocation3], 0 }
   0x4   :  { %12 = vsyncpa [#allocation3 + $0x1], 0 }
   0x5   :  { %13 = vsyncpa [#allocation6], 0 }
   0x6   :  { %15 = vsyncpa [#allocation6 + $0x1], 0 }
   0x7   :  { %16 = vsyncpa [#allocation4], 0 }
   0x8   :  { %18 = vsyncpa [#allocation4 + $0x1], 0 }
   0x9   :  { %19 = vsyncpa [#allocation9], 0 }
   0xa   :  { %21 = vsyncpa [#allocation9 + $0x1], 0  ;;  %s946_s15 = smov 0   ;;  %s948_s16 = smov 0  }
   0xb   :  { %s950_s17 = smov 0   ;;  %s952_s18 = smov 0  }
   0xc   :  { %s954_s19 = smov 0   ;;  %s956_s20 = smov 0  }
   0xd LB: > { %s977_s21 = sadd.s32 4294967295, %s913_s20   ;;  %s1257_s22 = sadd.s32 4294967294, %s913_s20   ;;  %s913_s20 = sphi %s956_s20, %s27_s20   ;;  %s909_s19 = sphi %s954_s19, %s1282_s19   ;;  %s905_s18 = sphi %s952_s18, %s1281_s18   ;;  %s901_s17 = sphi %s950_s17, %s1280_s17   ;;  %s897_s16 = sphi %s948_s16, %s1279_s16   ;;  %s893_s15 = sphi %s946_s15, %s1278_s15  }
   0xe   : > { %s46_s23 = sadd.s32 1, %s909_s19  ;;  %s61_s24 = sadd.s32 1, %s901_s17 }
   0xf   : > { %p48_p0 = scmp.ge.s32.totalorder %s46_s23, 2  ;;  %p68_p1 = scmp.ne.s32.totalorder %s901_s17, %s897_s16 }
  0x10   : > { %p69_p2 = scmp.eq.s32.totalorder %s913_s20, 0  ;;  %p74_p3 = scmp.ne.s32.totalorder %s897_s16, %s893_s15 }
  0x11   : > { %s1284_s23 = smov (%p48_p0, %s46_s23), 0  ;;  %p75_p5 = scmp.eq.s32.totalorder %s977_s21, 0 }
  0x12   : > { %p989_p4 = por %p69_p2, %p68_p1  ;;  %s56_s26 = ssub.s32 %s909_s19, %s1284_s23 }
  0x13   : > { %p134_p6 = scmp.eq.s32.totalorder %s977_s21, 1  ;;  %p59_p7 = scmp.eq.s32.totalorder %s56_s26, 0 }
  0x14   : > { %p997_p8 = por %p75_p5, %p74_p3  ;;  %p140_p10 = scmp.eq.s32.totalorder %s1257_s22, 1 }
  0x15   : > { %p1001_p9 = por %p134_p6, %p68_p1  ;;  %p655_p13 = scmp.lt.s32.totalorder %s913_s20, 2 }
  0x16   : > { %s1262_s27 = scalar_select %p997_p8, 1, 0 }
  0x17   : > { %s1263_s28 = scalar_select %p1001_p9, 1, 0 }
  0x18   : > { %s1008_s29 = scalar_select %p59_p7, %s901_s17, %s61_s24  }
  0x19   : > { %p1010_p11 = por %p140_p10, %p74_p3  ;;  %s1017_s5 = sand.u32 1, %s901_s17  }
  0x1a   : > { %s604_s6 = sshll.u32 %s1017_s5, 3  ;;  %s626_s7 = sshll.u32 %s909_s19, 7 }
  0x1b   : > { %s1264_s30 = scalar_select %p1010_p11, 1, 0 }
  0x1c   : > { %s1265_s0 = sld [smem:[#allocation15_spill]]  ;;  %s220_s11 = scalar_lea.vmem [#allocation2], %s604_s6 }
  0x1d   : > { %s233_s12 = sshll.u32 %s220_s11, 4  ;;  %p1030_p0 = pnand %p655_p13, %p989_p4  ;;  %s1026_s12 = int_to_ptr.vmem [resolvable:$true] %s233_s12 }
  0x1e   : > { %s217_s14 = scalar_lea.sflag [#allocation3], %s1017_s5 }
  0x1f   : > { %p709_p5 = pneg %p1030_p0 }
  0x22   : > { %s1024_s10 = scalar_lea.hbm %s1265_s0, %s626_s7  ;;  %s712_s25 = scalar_lea.hbm %s1265_s0, 256 }
  0x23   : > { %s707_s24 = scalar_lea.hbm %s1024_s10, 128  ;;  %p713_p4 = scmp.lt.u32.totalorder %s1024_s10, %s1265_s0 }
  0x24   : > { %p708_p3 = scmp.ne.s32.totalorder %s1024_s10, %s707_s24  ;;  %p714_p10 = scmp.lt.u32.totalorder %s712_s25, %s707_s24 }
  0x25   : > { %p716_p12 = scmp.lt.u32.totalorder %s707_s24, %s1024_s10 }
  0x26   : > { %p710_p6 = pnand %p709_p5, %p708_p3  ;;  %p715_p13 = por %p714_p10, %p713_p4 }
  0x28   : > { %p711_p7 = pneg %p710_p6  ;;  %p717_p1 = por %p716_p12, %p715_p13 }
  0x2a   : > { %p718_p2 = pnand %p717_p1, %p711_p7 }
  0x2c   : > { %721 = shalt.err (!%p718_p2)
}
  0x2d   : > { %s722_s9 = scalar_lea.vmem %s1026_s12, 128  ;;  %s915_s11 = smov [#allocation2]  }
  0x2e   : > { %p723_p3 = scmp.ne.s32.totalorder %s1026_s12, %s722_s9  ;;  %s727_s26 = sshll.u32 %s915_s11, 4  ;;  %s728_s26 = int_to_ptr.vmem [resolvable:$false] %s727_s26 }
  0x2f   : > { %s729_s6 = scalar_lea.vmem %s728_s26, 256  ;;  %p730_p9 = scmp.lt.s32.totalorder %s1026_s12, %s728_s26 }
  0x30   : > { %p725_p6 = pnand %p723_p3, %p709_p5  ;;  %p731_p4 = scmp.lt.s32.totalorder %s729_s6, %s722_s9 }
  0x32   : > { %p726_p11 = pneg %p725_p6  ;;  %p732_p10 = por %p731_p4, %p730_p9 }
  0x34   : > { %p733_p12 = pnand %p732_p10, %p726_p11 }
  0x36   : > { %736 = shalt.err (!%p733_p12)
}
  0x37   : > { %641 = dma.hbm_to_vmem [thread:$0]  (!%p1030_p0), %s1024_s10, 128, %s1026_s12, %s217_s14  }
  0x38   : > { %p1267_p1 = scmp.lt.s32.totalorder %s913_s20, 3  ;;  %p1268_p2 = scmp.ge.s32.totalorder %s913_s20, 1 }
  0x39   : > { %s607_s25 = sshll.u32 %s1017_s5, 1  ;;  %s627_s7 = sshll.u32 %s909_s19, 5 }
  0x3a   : > { %p1066_p7 = pnand %p1268_p2, %p1267_p1  ;;  %s1270_s1 = sld [smem:[#allocation16_spill]] }
  0x3b   : > { %s244_s26 = scalar_lea.vmem [#allocation5], %s607_s25  ;;  %s241_s10 = scalar_lea.sflag [#allocation6], %s1017_s5 }
  0x3c   : > { %s1269_s24 = scalar_select %p1066_p7, 1, 0 }
  0x3d   : > { %s257_s6 = sshll.u32 %s244_s26, 4  ;;  %s258_s6 = int_to_ptr.vmem [resolvable:$true] %s257_s6 }
  0x40   : > { %s1075_s11 = scalar_lea.hbm %s1270_s1, %s627_s7  ;;  %s742_s8 = scalar_lea.hbm %s1270_s1, 64 }
  0x41   : > { %s737_s12 = scalar_lea.hbm %s1075_s11, 32  ;;  %p743_p3 = scmp.lt.u32.totalorder %s1075_s11, %s1270_s1 }
  0x42   : > { %p738_p9 = scmp.ne.s32.totalorder %s1075_s11, %s737_s12  ;;  %p744_p6 = scmp.lt.u32.totalorder %s742_s8, %s737_s12 }
  0x43   : > { %p746_p10 = scmp.lt.u32.totalorder %s737_s12, %s1075_s11 }
  0x44   : > { %p740_p11 = pnand %p738_p9, %p709_p5  ;;  %p745_p4 = por %p744_p6, %p743_p3 }
  0x46   : > { %p741_p13 = pneg %p740_p11  ;;  %p747_p12 = por %p746_p10, %p745_p4 }
  0x48   : > { %p748_p1 = pnand %p747_p12, %p741_p13 }
  0x4a   : > { %751 = shalt.err (!%p748_p1)
}
  0x4b   : > { %s752_s5 = scalar_lea.vmem %s258_s6, 32  ;;  %s916_s25 = smov [#allocation5]  }
  0x4c   : > { %p753_p2 = scmp.ne.s32.totalorder %s258_s6, %s752_s5  ;;  %s757_s22 = sshll.u32 %s916_s25, 4  ;;  %s758_s22 = int_to_ptr.vmem [resolvable:$false] %s757_s22 }
  0x4d   : > { %s759_s26 = scalar_lea.vmem %s758_s22, 64  ;;  %p760_p8 = scmp.lt.s32.totalorder %s258_s6, %s758_s22 }
  0x4e   : > { %p755_p9 = pnand %p753_p2, %p709_p5  ;;  %p761_p7 = scmp.lt.s32.totalorder %s759_s26, %s752_s5 }
  0x50   : > { %p756_p11 = pneg %p755_p9  ;;  %p762_p3 = por %p761_p7, %p760_p8 }
  0x52   : > { %p763_p6 = pnand %p762_p3, %p756_p11 }
  0x54   : > { %766 = shalt.err (!%p763_p6)
}
  0x55   : > { %644 = dma.hbm_to_vmem [thread:$0]  (!%p1030_p0), %s1075_s11, 32, %s258_s6, %s241_s10  }
  0x56   : > { %p1271_p13 = scmp.ne.s32.totalorder %s1269_s24, 0 }
  0x57   : > { %s1100_s12 = sand.u32 (!%p1271_p13), 1, %s897_s16   ;;  %p1272_p5 = scmp.ne.s32.totalorder (!%p1271_p13), %s1262_s27, 0 }
  0x58   : > { %266 = sbr.rel (%p1271_p13) target bundleno = 176 (0xb0), region = 28  ;;  %s611_s14 = sshll.u32 (!%p1271_p13), %s1100_s12, 3 }
  0x59   : > { %s269_s8 = scalar_lea.sflag (!%p1271_p13), [#allocation3], %s1100_s12  ;;  %s272_s7 = scalar_lea.vmem (!%p1271_p13), [#allocation2], %s611_s14 }
  0x5f   : > { %876 = dma.done.wait (%p1272_p5), %s269_s8, 128  }
  0x60   : > { %878 = vsyncadd (%p1272_p5), %s269_s8, 4294967168  ;;  %s612_s13 = sshll.u32 %s1100_s12, 1  ;;  %s278_s24 = scalar_lea.sflag [#allocation6], %s1100_s12 }
  0x61   : > { %s281_s11 = scalar_lea.vmem [#allocation5], %s612_s13 }
  0x62   : > { %880 = dma.done.wait (%p1272_p5), %s278_s24, 32  }
  0x63   : > { %882 = vsyncadd (%p1272_p5), %s278_s24, 4294967264  ;;  %s613_s6 = sshll.u32 %s1100_s12, 2  ;;  %v338_v0 = vlaneseq  ;;  %v917_v1 = vmov 0.0   ;;  %v336_v5 = vld [vmem:[%s272_s7] sm:$0xff]  ;;  %v337_v6 = vld [vmem:[%s281_s11] sm:$0x3] }
  0x64   : > { %s1115_s10 = scalar_lea.vmem [#allocation8], %s613_s6  ;;  %s1118_s9 = scalar_lea.vmem [#allocation7], %s613_s6  ;;  %v364_v7 = vrot.slane %v336_v5, 4  ;;  %v351_v10 = vcombine.high %v336_v5, %v336_v5 }
  0x65   : > { %334 = vst [vmem:[%s1115_s10] sm:$0xf] %v917_v1  ;;  %333 = vst [vmem:[%s1118_s9] sm:$0xf] %v917_v1  ;;  %v339_v2 = vshrl.u32 %v338_v0, 7  ;;  %s1121_s5 = scalar_lea.vmem [#allocation10], %s613_s6  ;;  %s621_s22 = sshll.u32 %s905_s18, 6 }
  0x66   : > { %335 = vst [vmem:[%s1121_s5] sm:$0xf] %v917_v1  ;;  %s426_s25 = sshll.u32 %s1121_s5, 4  ;;  %s412_s26 = sshll.u32 %s1115_s10, 4  ;;  %v366_v12 = vadd.f32 %v364_v7, %v336_v5  ;;  %s1131_s25 = int_to_ptr.vmem [resolvable:$true] %s426_s25  ;;  %s1139_s26 = int_to_ptr.vmem [resolvable:$true] %s412_s26 }
  0x67   : > { %v342_v3 = vsub.s32 0, %v339_v2  ;;  %v346_v4 = vsub.s32 1, %v339_v2  ;;  %s398_s14 = sshll.u32 %s1118_s9, 4  ;;  %s1137_s7 = scalar_lea.hbm %s1254_s3, %s621_s22  ;;  %s1147_s14 = int_to_ptr.vmem [resolvable:$true] %s398_s14 }
  0x68   : > { %s1144_s11 = scalar_lea.hbm %s1253_s2, %s621_s22  ;;  %s1152_s18 = scalar_lea.hbm %s1255_s4, %s621_s22 }
  0x69   : > { %v343_v8 = vrot.slane %v337_v6, %v342_v3  ;;  %v347_v9 = vrot.slane %v337_v6, %v346_v4  ;;  %s1273_s8 = sand.u32 1, %s977_s21   ;;  %s767_s1 = scalar_lea.vmem %s1139_s26, 64 }
  0x6a   : > { %s1156_s0 = scalar_lea.sflag [#allocation9], %s1273_s8  ;;  %p768_p8 = scmp.ne.s32.totalorder %s1139_s26, %s767_s1 }
  0x6b   : > { %vm348_vm0 = vcmp.eq.s32.totalorder %v343_v8, %v339_v2  ;;  %vm349_vm1 = vcmp.eq.s32.totalorder %v347_v9, %v339_v2  ;;  %p1274_p0 = scmp.ne.s32.totalorder %s1263_s28, 0  ;;  %s918_s13 = smov [#allocation8]  }
  0x6c   : > { %v363_v11 = vld [vmem:[%s1115_s10] sm:$0xf]  ;;  %v359_v13 = vld [vmem:[%s1118_s9] sm:$0xf]  ;;  %v353_v14 = vsel %vm348_vm0, %v336_v5, 0.0  ;;  %v354_v15 = vsel %vm349_vm1, %v351_v10, 0.0 }
  0x6d   : > { %v616_v16 = vsel %vm348_vm0, 1.0, %v917_v1  ;;  %v617_v17 = vsel %vm349_vm1, 1.0, %v917_v1  ;;  %v369_v18 = vld [vmem:[%s1121_s5] sm:$0xf]  ;;  %v367_v19 = vadd.f32 %v366_v12, %v363_v11  ;;  %v360_v20 = vadd.f32 %v354_v15, %v353_v14  ;;  %p769_p7 = pnand %p768_p8, %p1274_p0  ;;  %s771_s24 = sshll.u32 %s918_s13, 4  ;;  %s772_s24 = int_to_ptr.vmem [resolvable:$false] %s771_s24 }
  0x6e   : > { %v370_v21 = vadd.f32 %v617_v17, %v616_v16  ;;  %p774_p10 = scmp.lt.s32.totalorder %s1139_s26, %s772_s24 }
  0x6f   : > { %368 = vst [vmem:[%s1115_s10] sm:$0xf] %v367_v19  ;;  %v361_v22 = vadd.f32 %v360_v20, %v359_v13  ;;  %p770_p4 = pneg %p769_p7  ;;  %s773_s10 = scalar_lea.vmem %s772_s24, 128 }
  0x70   : > { %v371_v23 = vadd.f32 %v370_v21, %v369_v18  ;;  %p775_p12 = scmp.lt.s32.totalorder %s773_s10, %s767_s1 }
  0x72   : > { %p776_p1 = por %p775_p12, %p774_p10 }
  0x74   : > { %p777_p2 = pnand %p776_p1, %p770_p4 }
  0x76   : > { %780 = shalt.err (!%p777_p2)
}
  0x77   : > { %s781_s21 = scalar_lea.hbm %s1137_s7, 64  ;;  %s785_s6 = scalar_lea.hbm %s1254_s3, 128 }
  0x78   : > { %p782_p9 = scmp.ne.s32.totalorder %s1137_s7, %s781_s21  ;;  %p786_p6 = scmp.lt.u32.totalorder %s1137_s7, %s1254_s3 }
  0x79   : > { %p787_p13 = scmp.lt.u32.totalorder %s785_s6, %s781_s21  ;;  %p789_p8 = scmp.lt.u32.totalorder %s781_s21, %s1137_s7 }
  0x7a   : > { %p783_p11 = pnand %p782_p9, %p1274_p0 }
  0x7b   : > { %p788_p5 = por %p787_p13, %p786_p6 }
  0x7c   : > { %p784_p3 = pneg %p783_p11 }
  0x7d   : > { %p790_p7 = por %p789_p8, %p788_p5 }
  0x7f   : > { %p791_p4 = pnand %p790_p7, %p784_p3 }
  0x81   : > { %794 = shalt.err (!%p791_p4)
}
  0x82   : > { %633 = dma.vmem_to_hbm [thread:$0]  (%p1274_p0), %s1139_s26, 64, %s1137_s7, %s1156_s0   ;;  %362 = vst [vmem:[%s1118_s9] sm:$0xf] %v361_v22  ;;  %372 = vst [vmem:[%s1121_s5] sm:$0xf] %v371_v23 }
  0x83   : > { %s374_s1 = scalar_lea.sflag [#allocation4], %s1100_s12  ;;  %s795_s24 = scalar_lea.vmem %s1147_s14, 64 }
  0x84   : > { %p796_p10 = scmp.ne.s32.totalorder %s1147_s14, %s795_s24  ;;  %s919_s10 = smov [#allocation7]  }
  0x85   : > { %s799_s21 = sshll.u32 %s919_s10, 4  ;;  %s800_s21 = int_to_ptr.vmem [resolvable:$false] %s799_s21 }
  0x86   : > { %p797_p12 = pnand %p796_p10, %p1274_p0  ;;  %s801_s27 = scalar_lea.vmem %s800_s21, 128 }
  0x87   : > { %p802_p2 = scmp.lt.s32.totalorder %s1147_s14, %s800_s21  ;;  %p803_p9 = scmp.lt.s32.totalorder %s801_s27, %s795_s24 }
  0x88   : > { %p798_p1 = pneg %p797_p12 }
  0x89   : > { %p804_p11 = por %p803_p9, %p802_p2 }
  0x8b   : > { %p805_p3 = pnand %p804_p11, %p798_p1 }
  0x8d   : > { %808 = shalt.err (!%p805_p3)
}
  0x8e   : > { %s809_s12 = scalar_lea.hbm %s1144_s11, 64  ;;  %s813_s26 = scalar_lea.hbm %s1253_s2, 128 }
  0x8f   : > { %p810_p6 = scmp.ne.s32.totalorder %s1144_s11, %s809_s12  ;;  %p814_p8 = scmp.lt.u32.totalorder %s1144_s11, %s1253_s2 }
  0x90   : > { %p815_p7 = scmp.lt.u32.totalorder %s813_s26, %s809_s12  ;;  %p817_p10 = scmp.lt.u32.totalorder %s809_s12, %s1144_s11 }
  0x91   : > { %p811_p13 = pnand %p810_p6, %p1274_p0 }
  0x92   : > { %p816_p4 = por %p815_p7, %p814_p8 }
  0x93   : > { %p812_p5 = pneg %p811_p13 }
  0x94   : > { %p818_p12 = por %p817_p10, %p816_p4 }
  0x96   : > { %p819_p1 = pnand %p818_p12, %p812_p5 }
  0x98   : > { %822 = shalt.err (!%p819_p1)
}
  0x99   : > { %632 = dma.vmem_to_hbm [thread:$0]  (%p1274_p0), %s1147_s14, 64, %s1144_s11, %s374_s1  }
  0x9a   : > { %s823_s6 = scalar_lea.vmem %s1131_s25, 64  ;;  %s920_s8 = smov [#allocation10]  }
  0x9b   : > { %p824_p2 = scmp.ne.s32.totalorder %s1131_s25, %s823_s6  ;;  %s827_s13 = sshll.u32 %s920_s8, 4  ;;  %s828_s13 = int_to_ptr.vmem [resolvable:$false] %s827_s13 }
  0x9c   : > { %s829_s24 = scalar_lea.vmem %s828_s13, 128  ;;  %p830_p3 = scmp.lt.s32.totalorder %s1131_s25, %s828_s13 }
  0x9d   : > { %p825_p9 = pnand %p824_p2, %p1274_p0  ;;  %p831_p6 = scmp.lt.s32.totalorder %s829_s24, %s823_s6 }
  0x9f   : > { %p826_p11 = pneg %p825_p9  ;;  %p832_p13 = por %p831_p6, %p830_p3 }
  0xa1   : > { %p833_p5 = pnand %p832_p13, %p826_p11 }
  0xa3   : > { %836 = shalt.err (!%p833_p5)
}
  0xa4   : > { %s837_s14 = scalar_lea.hbm %s1152_s18, 64  ;;  %s841_s10 = scalar_lea.hbm %s1255_s4, 128 }
  0xa5   : > { %p838_p8 = scmp.ne.s32.totalorder %s1152_s18, %s837_s14  ;;  %p842_p10 = scmp.lt.u32.totalorder %s1152_s18, %s1255_s4 }
  0xa6   : > { %p843_p12 = scmp.lt.u32.totalorder %s841_s10, %s837_s14  ;;  %p845_p2 = scmp.lt.u32.totalorder %s837_s14, %s1152_s18 }
  0xa7   : > { %p839_p7 = pnand %p838_p8, %p1274_p0 }
  0xa8   : > { %p844_p1 = por %p843_p12, %p842_p10 }
  0xa9   : > { %p840_p4 = pneg %p839_p7 }
  0xaa   : > { %p846_p9 = por %p845_p2, %p844_p1 }
  0xac   : > { %p847_p11 = pnand %p846_p9, %p840_p4 }
  0xae   : > { %850 = shalt.err (!%p847_p11)
}
  0xaf   : > { %634 = dma.vmem_to_hbm [thread:$0]  (%p1274_p0), %s1131_s25, 64, %s1152_s18, %s1156_s0  }
  0xb0 PF: > { %s438_s12 = sand.u32 1, %s893_s15   ;;  %p1275_p3 = scmp.ne.s32.totalorder %s1264_s30, 0 }
  0xb1   : > { %p1276_p6 = scmp.ge.s32.totalorder %s913_s20, 2  ;;  %s439_s9 = scalar_lea.sflag [#allocation4], %s438_s12 }
  0xb3   : > { %p646_p13 = pnand %p1276_p6, %p1275_p3 }
  0xb5   : > { %884 = dma.done.wait (!%p646_p13), %s439_s9, 64  }
  0xb6   : > { %886 = vsyncadd (!%p646_p13), %s439_s9, 4294967232  ;;  %s1277_s5 = sadd.s32 4294967294, %s913_s20  }
  0xb7   : > { %s447_s26 = sand.u32 1, %s1277_s5  }
  0xb8   : > { %s448_s7 = scalar_lea.sflag [#allocation9], %s447_s26 }
  0xb9   : > { %888 = dma.done.wait (!%p646_p13), %s448_s7, 128  }
  0xba   : > { %890 = vsyncadd (!%p646_p13), %s448_s7, 4294967168  ;;  %s27_s20 = sadd.s32 1, %s913_s20   ;;  %s1278_s15 = smov %s897_s16 }
  0xbb   : > { %p24_p0 = scmp.ge.s32.totalorder %s27_s20, 4   ;;  %s1279_s16 = smov %s901_s17 }
  0xbc   : > { %s1280_s17 = smov %s1008_s29  ;;  %s1281_s18 = smov %s909_s19 }
  0xbd   : > { %s1282_s19 = smov %s1284_s23  ;;  %26 = sbr.rel (!%p24_p0) target bundleno = 13 (0xd), region = 122 }
  0xc4   :  { %462 = vsyncpa [#allocation3], 1 }
  0xc5   :  { %464 = vsyncpa [#allocation3 + $0x1], 1 }
  0xc6   :  { %465 = vsyncpa [#allocation6], 1 }
  0xc7   :  { %467 = vsyncpa [#allocation6 + $0x1], 1 }
  0xc8   :  { %468 = vsyncpa [#allocation4], 1 }
  0xc9   :  { %470 = vsyncpa [#allocation4 + $0x1], 1 }
  0xca   :  { %471 = vsyncpa [#allocation9], 1 }
  0xcb   :  { %473 = vsyncpa [#allocation9 + $0x1], 1 }

</bundles_post_ra>
